<compile_context>
chip_gen: v6e
topology: v6e:2x2x1
jax: 0.10.0
libtpu: 0.0.40
codegen_flags: <defaults>
</compile_context>

<pallas_src>
import functools

import jax
import jax.numpy as jnp
from jax.experimental import pallas as pl
from jax.experimental.pallas import tpu as pltpu

_LEAKY_SLOPE = 0.01  # PyTorch nn.LeakyReLU default negative_slope


def _se_scale(m, w1, b1, w2t, b2):
    """fc(m): Linear -> LeakyReLU -> Linear -> Sigmoid, all on the VPU.

    m: (Bt, C) f32, w1: (hid, C), b1: (1, hid), w2t: (hid, C), b2: (1, C).
    Returns (Bt, C) f32 in (0, 1).
    """
    # Linear(C -> hid): broadcast-multiply + lane reduce (no MXU push/pop).
    h = jnp.sum(m[:, None, :] * w1[None, :, :], axis=-1) + b1            # (Bt, hid)
    h = jnp.where(h > 0, h, _LEAKY_SLOPE * h)                            # LeakyReLU
    # Linear(hid -> C): broadcast-multiply + sublane reduce, lane-dense output.
    z = jnp.sum(h[:, :, None] * w2t[None, :, :], axis=1) + b2            # (Bt, C)
    # Sigmoid = exp(-z) (EUP) + reciprocal.  approx=True would push the divide
    # onto the EUP too but costs ~1e-4 rel error; keep exact here.
    return pl.reciprocal(1.0 + jnp.exp(-z), approx=False)


def _fused_kernel(x_ref, w1_ref, b1_ref, w2t_ref, b2_ref, o_ref):
    """Single pass: full (Bt, C, S) slab resident in VMEM."""
    x = x_ref[...]                                                       # (Bt, C, S)
    inv_s = 1.0 / x.shape[-1]
    m = jnp.sum(x.astype(jnp.float32), axis=-1) * inv_s                  # (Bt, C)
    y = _se_scale(m, w1_ref[...], b1_ref[...], w2t_ref[...], b2_ref[...])
    # Channel-wise scale in the input dtype (keeps bf16 inputs bf16 on v6e/v7x).
    o_ref[...] = (x * y[:, :, None].astype(x.dtype)).astype(o_ref.dtype)


def _twopass_kernel(x_ref, w1_ref, b1_ref, w2t_ref, b2_ref, o_ref,
                    sum_sc, y_sc, *, true_s):
    """Spatial split: pass 0 accumulates pooled sums, pass 1 applies the scale."""
    p = pl.program_id(1)
    s_idx = pl.program_id(2)
    n_s = pl.num_programs(2)

    @pl.when(p == 0)
    def _accumulate():
        @pl.when(s_idx == 0)
        def _():
            sum_sc[...] = jnp.zeros_like(sum_sc)

        x = x_ref[...].astype(jnp.float32)                               # (Bt, C, St)
        st = x.shape[-1]
        # Mask spatial padding in a (possibly partial) last block so the mean
        # divides by the true S.
        col = jax.lax.broadcasted_iota(jnp.int32, x.shape, 2) + s_idx * st
        x = jnp.where(col < true_s, x, 0.0)
        sum_sc[...] += jnp.sum(x, axis=-1)                               # (Bt, C)

        @pl.when(s_idx == n_s - 1)
        def _finalize():
            m = sum_sc[...] * (1.0 / true_s)
            y_sc[...] = _se_scale(m, w1_ref[...], b1_ref[...],
                                  w2t_ref[...], b2_ref[...])

    @pl.when(p == 1)
    def _scale():
        x = x_ref[...]
        o_ref[...] = (x * y_sc[...][:, :, None].astype(x.dtype)).astype(o_ref.dtype)


def _pick_batch_tile(batch, per_elem_bytes, target_bytes):
    """Batch elements per grid step: big enough to amortize the ~0.35 us
    per-step overhead, but keep >= 2 grid steps when the batch allows it so
    both v7x TensorCores get work."""
    bt = int(max(1, min(batch, target_bytes // max(per_elem_bytes, 1))))
    if bt >= batch and batch > 1:
        bt = (batch + 1) // 2
    while batch % bt:
        bt -= 1
    return bt


def final_conv(x, w1, b1, w2, b2, *,
               block_bytes_target=2 * 1024 * 1024,
               block_bytes_cap=4 * 1024 * 1024,
               force_spatial_split=False,
               spatial_block=None):
    """SE-style Final_conv forward.  x: (B, C, D, H, W)."""
    b, c, d, h, w = x.shape
    s = d * h * w
    hid = w1.shape[0]
    itemsize = jnp.dtype(x.dtype).itemsize
    per_elem_bytes = c * s * itemsize

    x_flat = x.reshape(b, c, s)
    w1f = w1.astype(jnp.float32)                      # (hid, C)
    b1r = b1.reshape(1, hid).astype(jnp.float32)      # lane-dense row vector
    w2t = w2.T.astype(jnp.float32)                    # (hid, C), pre-transposed
    b2r = b2.reshape(1, c).astype(jnp.float32)        # lane-dense row vector

    # Explicit VMEM budget: blocks are capped at <= 4 MiB, so in/out
    # double-buffers + params + scratch stay well under 32 MiB on every chip
    # (v5e/v6e default scoped limits are 16/32 MiB; v7x physical is 64 MiB).
    vmem_limit = 32 * 1024 * 1024

    use_split = force_spatial_split or per_elem_bytes > block_bytes_cap

    if not use_split:
        # ---- fused single-pass: x read once, written once -----------------
        bt = _pick_batch_tile(b, per_elem_bytes, block_bytes_target)
        grid = (b // bt,)
        cost = pl.CostEstimate(
            flops=2 * b * c * s + 4 * b * c * hid,
            transcendentals=b * c,
            bytes_accessed=2 * b * c * s * itemsize)
        out_flat = pl.pallas_call(
            _fused_kernel,
            out_shape=jax.ShapeDtypeStruct((b, c, s), x.dtype),
            grid_spec=pltpu.PrefetchScalarGridSpec(
                num_scalar_prefetch=0,
                grid=grid,
                in_specs=[
                    pl.BlockSpec((bt, c, s), lambda i: (i, 0, 0)),
                    pl.BlockSpec((hid, c), lambda i: (0, 0)),
                    pl.BlockSpec((1, hid), lambda i: (0, 0)),
                    pl.BlockSpec((hid, c), lambda i: (0, 0)),
                    pl.BlockSpec((1, c), lambda i: (0, 0)),
                ],
                out_specs=pl.BlockSpec((bt, c, s), lambda i: (i, 0, 0)),
            ),
            compiler_params=pltpu.CompilerParams(
                dimension_semantics=("parallel",),
                vmem_limit_bytes=vmem_limit),
            cost_estimate=cost,
        )(x_flat, w1f, b1r, w2t, b2r)
    else:
        # ---- spatial-split two-pass (large D*H*W; also used for testing) --
        bt = 1
        if spatial_block is not None:
            st = int(spatial_block)
        else:
            st = (block_bytes_target // (bt * c * itemsize)) // 128 * 128
            st = max(128, int(st))
        if st >= s:
            st = s                        # single spatial block (full-dim exempt)
        n_s = -(-s // st)
        grid = (b // bt, 2, n_s)
        cost = pl.CostEstimate(
            flops=2 * b * c * s + 4 * b * c * hid,
            transcendentals=b * c,
            bytes_accessed=3 * b * c * s * itemsize)   # x read twice, written once
        kernel = functools.partial(_twopass_kernel, true_s=s)
        out_flat = pl.pallas_call(
            kernel,
            out_shape=jax.ShapeDtypeStruct((b, c, s), x.dtype),
            grid_spec=pltpu.PrefetchScalarGridSpec(
                num_scalar_prefetch=0,
                grid=grid,
                in_specs=[
                    pl.BlockSpec((bt, c, st), lambda i, p, j: (i, 0, j)),
                    pl.BlockSpec((hid, c), lambda i, p, j: (0, 0)),
                    pl.BlockSpec((1, hid), lambda i, p, j: (0, 0)),
                    pl.BlockSpec((hid, c), lambda i, p, j: (0, 0)),
                    pl.BlockSpec((1, c), lambda i, p, j: (0, 0)),
                ],
                # Pass 0 never writes: pin the output block index (j*p == 0) so
                # no stale writeback happens; pass 1 sweeps the spatial blocks.
                out_specs=pl.BlockSpec((bt, c, st), lambda i, p, j: (i, 0, j * p)),
                scratch_shapes=[
                    pltpu.VMEM((bt, c), jnp.float32),   # pooled partial sums
                    pltpu.VMEM((bt, c), jnp.float32),   # sigmoid scale
                ],
            ),
            compiler_params=pltpu.CompilerParams(
                dimension_semantics=("parallel", "arbitrary", "arbitrary"),
                vmem_limit_bytes=vmem_limit),
            cost_estimate=cost,
        )(x_flat, w1f, b1r, w2t, b2r)

    return out_flat.reshape(b, c, d, h, w)


if __name__ == "__main__":
    # Small shapes consistent with the module: in_channels = out_channels = 32,
    # reduction = 16 -> hidden = 2.  Spatial (D, H, W) = (2, 8, 16).
    B, C, D, H, W = 2, 32, 2, 8, 16
    reduction = 16
    hidden = C // reduction

    key = jax.random.PRNGKey(0)
    kx, k1, k2, k3, k4 = jax.random.split(key, 5)

    x = jax.random.normal(kx, (B, C, D, H, W), dtype=jnp.float32)
    # Deterministic synthetic parameters (PyTorch Linear convention: (out, in)).
    w1 = jax.random.normal(k1, (hidden, C), dtype=jnp.float32) * 0.1
    b1 = jax.random.normal(k2, (hidden,), dtype=jnp.float32) * 0.1
    w2 = jax.random.normal(k3, (C, hidden), dtype=jnp.float32) * 0.1
    b2 = jax.random.normal(k4, (C,), dtype=jnp.float32) * 0.1

    # Pure-JAX reference (same math, no Pallas).
    m = jnp.mean(x, axis=(2, 3, 4))                       # (B, C)
    hh = m @ w1.T + b1
    hh = jnp.where(hh > 0, hh, 0.01 * hh)
    y = jax.nn.sigmoid(hh @ w2.T + b2)                    # (B, C)
    ref = x * y[:, :, None, None, None]

    # Path 1: fused single-pass (default for small/medium volumes).
    out = final_conv(x, w1, b1, w2, b2)
    jax.block_until_ready(out)
    assert jnp.allclose(out, ref, atol=1e-5, rtol=1e-5), "fused path mismatch"

    # Path 2: spatial-split two-pass (used for large D*H*W; exercised here
    # with a forced 128-wide spatial block to validate the accumulate/scale
    # machinery on small shapes).
    out2 = final_conv(x, w1, b1, w2, b2,
                      force_spatial_split=True, spatial_block=128)
    jax.block_until_ready(out2)
    assert jnp.allclose(out2, ref, atol=1e-5, rtol=1e-5), "split path mismatch"

    print("KERNEL_OK")
</pallas_src>

<mosaic_0001>
module attributes {stable_mosaic.version = 11 : i64} {
  func.func @_fused_kernel(%arg0: i32, %arg1: memref<1x32x256xf32, #tpu.memory_space<vmem>>, %arg2: memref<2x32xf32, #tpu.memory_space<vmem>>, %arg3: memref<1x2xf32, #tpu.memory_space<vmem>>, %arg4: memref<2x32xf32, #tpu.memory_space<vmem>>, %arg5: memref<1x32xf32, #tpu.memory_space<vmem>>, %arg6: memref<1x32x256xf32, #tpu.memory_space<vmem>>) attributes {dimension_semantics = [#tpu.dimension_semantics<parallel>], iteration_bounds = array<i64: 2>, scalar_prefetch = 0 : i64, scratch_operands = 0 : i64, tpu.core_type = #tpu.core_type<tc>, window_params = [{transform_indices = @transform_0, window_bounds = array<i64: 1, 32, 256>}, {pipeline_mode = #tpu.pipeline_mode<synchronous>, transform_indices = @transform_1, window_bounds = array<i64: 2, 32>}, {pipeline_mode = #tpu.pipeline_mode<synchronous>, transform_indices = @transform_2, window_bounds = array<i64: 1, 2>}, {pipeline_mode = #tpu.pipeline_mode<synchronous>, transform_indices = @transform_3, window_bounds = array<i64: 2, 32>}, {pipeline_mode = #tpu.pipeline_mode<synchronous>, transform_indices = @transform_4, window_bounds = array<i64: 1, 32>}, {transform_indices = @transform_5, window_bounds = array<i64: 1, 32, 256>}]} {
    %c0 = arith.constant 0 : index
    %c0_0 = arith.constant 0 : index
    %c0_1 = arith.constant 0 : index
    %0 = vector.load %arg1[%c0, %c0_0, %c0_1] : memref<1x32x256xf32, #tpu.memory_space<vmem>>, vector<1x32x256xf32>
    %cst = arith.constant dense<0.000000e+00> : vector<1x32xf32>
    %1 = vector.multi_reduction <add>, %0, %cst [2] : vector<1x32x256xf32> to vector<1x32xf32>
    %cst_2 = arith.constant 3.906250e-03 : f32
    %2 = vector.broadcast %cst_2 : f32 to vector<1x32xf32>
    %3 = arith.mulf %1, %2 : vector<1x32xf32>
    %c0_3 = arith.constant 0 : index
    %c0_4 = arith.constant 0 : index
    %4 = vector.load %arg2[%c0_3, %c0_4] : memref<2x32xf32, #tpu.memory_space<vmem>>, vector<2x32xf32>
    %c0_5 = arith.constant 0 : index
    %c0_6 = arith.constant 0 : index
    %5 = vector.load %arg3[%c0_5, %c0_6] : memref<1x2xf32, #tpu.memory_space<vmem>>, vector<1x2xf32>
    %c0_7 = arith.constant 0 : index
    %c0_8 = arith.constant 0 : index
    %6 = vector.load %arg4[%c0_7, %c0_8] : memref<2x32xf32, #tpu.memory_space<vmem>>, vector<2x32xf32>
    %c0_9 = arith.constant 0 : index
    %c0_10 = arith.constant 0 : index
    %7 = vector.load %arg5[%c0_9, %c0_10] : memref<1x32xf32, #tpu.memory_space<vmem>>, vector<1x32xf32>
    %8 = vector.shape_cast %3 : vector<1x32xf32> to vector<1x1x32xf32>
    %9 = vector.shape_cast %4 : vector<2x32xf32> to vector<1x2x32xf32>
    %10 = vector.broadcast %8 : vector<1x1x32xf32> to vector<1x2x32xf32>
    %11 = arith.mulf %10, %9 : vector<1x2x32xf32>
    %cst_11 = arith.constant dense<0.000000e+00> : vector<1x2xf32>
    %12 = vector.multi_reduction <add>, %11, %cst_11 [2] : vector<1x2x32xf32> to vector<1x2xf32>
    %13 = arith.addf %12, %5 : vector<1x2xf32>
    %cst_12 = arith.constant 0.000000e+00 : f32
    %14 = vector.broadcast %cst_12 : f32 to vector<1x2xf32>
    %15 = arith.cmpf ogt, %13, %14 : vector<1x2xf32>
    %cst_13 = arith.constant 0.00999999977 : f32
    %16 = vector.broadcast %cst_13 : f32 to vector<1x2xf32>
    %17 = arith.mulf %16, %13 : vector<1x2xf32>
    %18 = arith.select %15, %13, %17 : vector<1x2xi1>, vector<1x2xf32>
    %19 = vector.shape_cast %18 : vector<1x2xf32> to vector<1x2x1xf32>
    %20 = vector.shape_cast %6 : vector<2x32xf32> to vector<1x2x32xf32>
    %21 = vector.broadcast %19 : vector<1x2x1xf32> to vector<1x2x32xf32>
    %22 = arith.mulf %21, %20 : vector<1x2x32xf32>
    %cst_14 = arith.constant dense<0.000000e+00> : vector<1x32xf32>
    %23 = vector.multi_reduction <add>, %22, %cst_14 [1] : vector<1x2x32xf32> to vector<1x32xf32>
    %24 = arith.addf %23, %7 : vector<1x32xf32>
    %cst_15 = arith.constant 0.000000e+00 : f32
    %25 = vector.broadcast %cst_15 : f32 to vector<1x32xf32>
    %26 = arith.subf %25, %24 : vector<1x32xf32>
    %27 = math.exp %26 : vector<1x32xf32>
    %cst_16 = arith.constant 1.000000e+00 : f32
    %28 = vector.broadcast %cst_16 : f32 to vector<1x32xf32>
    %29 = arith.addf %28, %27 : vector<1x32xf32>
    %30 = tpu.reciprocal %29 : vector<1x32xf32> -> vector<1x32xf32>
    %31 = vector.shape_cast %30 : vector<1x32xf32> to vector<1x32x1xf32>
    %32 = vector.broadcast %31 : vector<1x32x1xf32> to vector<1x32x256xf32>
    %33 = arith.mulf %0, %32 : vector<1x32x256xf32>
    %c0_17 = arith.constant 0 : index
    %c0_18 = arith.constant 0 : index
    %c0_19 = arith.constant 0 : index
    %34 = vector.load %arg6[%c0_17, %c0_18, %c0_19] : memref<1x32x256xf32, #tpu.memory_space<vmem>>, vector<1x32x256xf32>
    tpu.vector_store %arg6[%c0_17, %c0_18, %c0_19], %33 {strides = array<i32>} : memref<1x32x256xf32, #tpu.memory_space<vmem>>, vector<1x32x256xf32>,
    return
  }
  func.func @transform_0(%arg0: i32) -> (i32, i32, i32) {
    %c0_i32 = arith.constant 0 : i32
    %c0_i32_0 = arith.constant 0 : i32
    %c0_i32_1 = arith.constant 0 : i32
    return %arg0, %c0_i32, %c0_i32_0 : i32, i32, i32
  }
  func.func @transform_1(%arg0: i32) -> (i32, i32) {
    %c0_i32 = arith.constant 0 : i32
    %c0_i32_0 = arith.constant 0 : i32
    %c0_i32_1 = arith.constant 0 : i32
    return %c0_i32, %c0_i32_0 : i32, i32
  }
  func.func @transform_2(%arg0: i32) -> (i32, i32) {
    %c0_i32 = arith.constant 0 : i32
    %c0_i32_0 = arith.constant 0 : i32
    %c0_i32_1 = arith.constant 0 : i32
    return %c0_i32, %c0_i32_0 : i32, i32
  }
  func.func @transform_3(%arg0: i32) -> (i32, i32) {
    %c0_i32 = arith.constant 0 : i32
    %c0_i32_0 = arith.constant 0 : i32
    %c0_i32_1 = arith.constant 0 : i32
    return %c0_i32, %c0_i32_0 : i32, i32
  }
  func.func @transform_4(%arg0: i32) -> (i32, i32) {
    %c0_i32 = arith.constant 0 : i32
    %c0_i32_0 = arith.constant 0 : i32
    %c0_i32_1 = arith.constant 0 : i32
    return %c0_i32, %c0_i32_0 : i32, i32
  }
  func.func @transform_5(%arg0: i32) -> (i32, i32, i32) {
    %c0_i32 = arith.constant 0 : i32
    %c0_i32_0 = arith.constant 0 : i32
    %c0_i32_1 = arith.constant 0 : i32
    return %arg0, %c0_i32, %c0_i32_0 : i32, i32, i32
  }
}

</mosaic_0001>

<bundles_post_ra>
// kernel: tpu_custom_call.1
= control target key start
LH: loop header
LB: loop body
LE: loop exit
PB: predicated region body
PF: predicated region fallthrough
CT: control target
= control target key end

     0   :  { %10 = vsyncpa [#allocation3], 0  ;;  %s1077_s0 = inlined_call_operand.hbm [shape: f32[2,32,256], index: 0, kind: input, shape index: {}]   ;;  %s1078_s1 = inlined_call_operand.hbm [shape: f32[2,32], index: 1, kind: input, shape index: {}]   ;;  %s1079_s2 = inlined_call_operand.vmem [shape: f32[1,2], index: 2, kind: input, shape index: {}]   ;;  %s1080_s3 = inlined_call_operand.vmem [shape: f32[2,32], index: 3, kind: input, shape index: {}]   ;;  %s1081_s4 = inlined_call_operand.vmem [shape: f32[1,32], index: 4, kind: input, shape index: {}]   ;;  %s1082_s5 = inlined_call_operand.hbm [shape: f32[2,32,256], index: 5, kind: output, shape index: {}]  }
   0x1   :  { %12 = vsyncpa [#allocation3 + $0x1], 0 }
   0x2   :  { %13 = vsyncpa [#allocation6], 0 }
   0x3   :  { %14 = vsyncpa [#allocation4], 0 }
   0x4   :  { %16 = vsyncpa [#allocation4 + $0x1], 0  ;;  %s837_s18 = smov 0   ;;  %s839_s19 = smov 0  }
   0x5   :  { %s841_s20 = smov 0   ;;  %s843_s21 = smov 0  }
   0x6 LB: > { %s858_s22 = sadd.s32 4294967295, %s797_s21   ;;  %s588_s23 = sadd.s32 4294967294, %s797_s21   ;;  %s797_s21 = sphi %s843_s21, %s1105_s21   ;;  %s793_s20 = sphi %s841_s20, %s1104_s20   ;;  %s789_s19 = sphi %s839_s19, %s1103_s19   ;;  %s785_s18 = sphi %s837_s18, %s1102_s18  }
   0x7   : > { %s862_s24 = sadd.s32 1, %s797_s21   ;;  %s29_s25 = sadd.s32 1, %s793_s20 }
   0x8   : > { %s26_s26 = ssub.s32 %s797_s21, %s862_s24  ;;  %p36_p0 = scmp.ne.s32.totalorder %s793_s20, %s789_s19 }
   0x9   : > { %p27_p1 = scmp.eq.s32.totalorder %s26_s26, 0  ;;  %p37_p2 = scmp.eq.s32.totalorder %s797_s21, 0 }
   0xa   : > { %p42_p3 = scmp.ne.s32.totalorder %s789_s19, %s785_s18  ;;  %p1083_p4 = scmp.eq.s32.totalorder %s858_s22, 0 }
   0xb   : > { %s874_s27 = scalar_select %p27_p1, %s793_s20, %s29_s25  }
   0xc   : > { %p876_p5 = por %p37_p2, %p36_p0  ;;  %p882_p6 = por %p1083_p4, %p42_p3 }
   0xd   : > { %p150_p7 = scmp.eq.s32.totalorder %s858_s22, 1  ;;  %p156_p8 = scmp.eq.s32.totalorder %s588_s23, 1 }
   0xe   : > { %s1088_s29 = scalar_select %p882_p6, 1, 0 }
   0xf   : > { %p589_p9 = scmp.ge.s32.totalorder %s797_s21, 1  ;;  %p163_p10 = scmp.lt.s32.totalorder %s797_s21, 3 }
  0x10   : > { %p889_p11 = por %p150_p7, %p36_p0  ;;  %p893_p12 = por %p156_p8, %p42_p3 }
  0x11   : > { %p897_p13 = pnand %p589_p9, %p163_p10  ;;  %s799_s8 = smov [#allocation5]  }
  0x12   : > { %s1089_s30 = scalar_select %p889_p11, 1, 0 }
  0x13   : > { %s1090_s6 = scalar_select %p893_p12, 1, 0 }
  0x14   : > { %s1091_s7 = scalar_select %p897_p13, 1, 0 }
  0x15   : > { %p615_p2 = pneg %p897_p13  ;;  %s176_s9 = sshll.u32 %s799_s8, 4  ;;  %s177_s9 = int_to_ptr.vmem [resolvable:$true] %s176_s9 }
  0x16   : > { %p628_p4 = scmp.lt.s32.totalorder %s797_s21, 2  ;;  %p1092_p0 = scmp.eq.s32.totalorder %s858_s22, 0 }
  0x17   : > { %s196_s11 = sand.u32 1, %s793_s20   ;;  %s686_s14 = scalar_lea.vmem %s177_s9, 32 }
  0x18   : > { %p907_p7 = pnand %p615_p2, %p1092_p0  ;;  %p914_p3 = pnand %p628_p4, %p876_p5 }
  0x19   : > { %s592_s13 = sshll.u32 %s196_s11, 6  ;;  %p687_p9 = scmp.ne.s32.totalorder %s177_s9, %s686_s14 }
  0x1a   : > { %p677_p8 = pneg %p907_p7  ;;  %p694_p12 = scmp.lt.s32.totalorder %s177_s9, %s177_s9 }
  0x1b   : > { %p695_p11 = scmp.lt.s32.totalorder %s686_s14, %s686_s14 }
  0x1c   : > { %p689_p10 = pnand %p687_p9, %p677_p8 }
  0x1d   : > { %p696_p2 = por %p695_p11, %p694_p12 }
  0x1e   : > { %p690_p1 = pneg %p689_p10 }
  0x20   : > { %p697_p0 = pnand %p696_p2, %p690_p1 }
  0x22   : > { %700 = shalt.err (!%p697_p0)
}
  0x23   : > { %618 = dma.hbm_to_vmem [thread:$0]  (!%p907_p7), %s1078_s1, 32, %s177_s9, [#allocation6]  }
  0x24   : > { %s605_s17 = sshll.u32 %s797_s21, 10  ;;  %s200_s23 = scalar_lea.vmem [#allocation2], %s592_s13 }
  0x25   : > { %s207_s25 = sshll.u32 %s200_s23, 4  ;;  %s929_s8 = scalar_lea.hbm %s1077_s0, %s605_s17  ;;  %s931_s25 = int_to_ptr.vmem [resolvable:$true] %s207_s25 }
  0x26   : > { %s933_s10 = scalar_lea.sflag [#allocation3], %s196_s11  ;;  %s701_s14 = scalar_lea.hbm %s929_s8, 1024 }
  0x27   : > { %p702_p4 = scmp.ne.s32.totalorder %s929_s8, %s701_s14  ;;  %p703_p5 = pneg %p914_p3 }
  0x28   : > { %s706_s15 = scalar_lea.hbm %s1077_s0, 2048  ;;  %p707_p1 = scmp.lt.s32.totalorder %s929_s8, %s1077_s0 }
  0x29   : > { %p704_p11 = pnand %p703_p5, %p702_p4  ;;  %p708_p7 = scmp.lt.s32.totalorder %s706_s15, %s701_s14 }
  0x2b   : > { %p705_p12 = pneg %p704_p11  ;;  %p709_p8 = por %p708_p7, %p707_p1 }
  0x2d   : > { %p710_p9 = pnand %p709_p8, %p705_p12 }
  0x2f   : > { %713 = shalt.err (!%p710_p9)
}
  0x30   : > { %s714_s11 = scalar_lea.vmem %s931_s25, 1024  ;;  %s800_s23 = smov [#allocation2]  }
  0x31   : > { %p715_p10 = scmp.ne.s32.totalorder %s931_s25, %s714_s11  ;;  %s719_s26 = sshll.u32 %s800_s23, 4  ;;  %s720_s26 = int_to_ptr.vmem [resolvable:$false] %s719_s26 }
  0x32   : > { %s721_s28 = scalar_lea.vmem %s720_s26, 2048  ;;  %p722_p4 = scmp.lt.s32.totalorder %s931_s25, %s720_s26 }
  0x33   : > { %p717_p2 = pnand %p715_p10, %p703_p5  ;;  %p723_p11 = scmp.lt.s32.totalorder %s721_s28, %s714_s11 }
  0x35   : > { %p718_p0 = pneg %p717_p2  ;;  %p724_p6 = por %p723_p11, %p722_p4 }
  0x37   : > { %p725_p13 = pnand %p724_p6, %p718_p0 }
  0x39   : > { %728 = shalt.err (!%p725_p13)
}
  0x3a   : > { %s801_s14 = smov 256   ;;  %s802_s9 = smov 16  }
  0x3b   : > { %622 = dma.hbm_to_vmem [thread:$0]  (!%p914_p3), %s929_s8, 1024, %s931_s25, %s933_s10, %s801_s14, %s801_s14, %s802_s9  }
  0x3c   : > { %p1095_p5 = scmp.ne.s32.totalorder %s1091_s7, 0 }
  0x3d   : > { %s957_s13 = sand.u32 (!%p1095_p5), 1, %s789_s19   ;;  %p1096_p6 = scmp.ne.s32.totalorder (!%p1095_p5), %s1088_s29, 0 }
  0x3e   : > { %219 = sbr.rel (%p1095_p5) target bundleno = 830 (0x33e), region = 40  ;;  %s596_s15 = sshll.u32 (!%p1095_p5), %s957_s13, 6 }
  0x3f   : > { %s222_s16 = scalar_lea.sflag (!%p1095_p5), [#allocation3], %s957_s13  ;;  %s225_s17 = scalar_lea.vmem (!%p1095_p5), [#allocation2], %s596_s15 }
  0x43   : > { %772 = dma.done.wait (%p1096_p6), %s222_s16, 1024  }
  0x44   : > { %774 = vsyncadd (%p1096_p6), %s222_s16, 4294966272  ;;  %p1097_p13 = scmp.eq.s32.totalorder %s858_s22, 0 }
  0x46   : > { %776 = dma.done.wait (%p1097_p13), [#allocation6], 32   ;;  %p1098_p3 = pmov %p1097_p13 }
  0x47   : > { %v971_v0 = vld [vmem:[%s225_s17 + $0x20] sm:$0xff]  ;;  %v973_v1 = vld [vmem:[%s225_s17 + $0x28] sm:$0xff]  ;;  %v981_v5 = vld [vmem:[%s225_s17 + $0x30] sm:$0xff]  ;;  %v285_v12 = vlaneseq  ;;  %v803_v18 = vmov 0   ;;  %vm382_vm0 = vcmask 130112   ;;  %vm389_vm1 = vcmask 195712  }
  0x48   : > { %778 = vsyncadd (%p1098_p3), [#allocation6], 4294967264  ;;  %v975_v2 = vld [vmem:[%s225_s17] sm:$0xff]  ;;  %v270_v3 = vadd.f32 %v973_v1, %v971_v0  ;;  %v979_v4 = vld [vmem:[%s225_s17 + $0x8] sm:$0xff]  ;;  %670 = vset.pattern.permute.xlu1 %v803_v18  ;;  %669 = vset.pattern.permute.xlu0 %v803_v18  ;;  %vm396_vm2 = vcmask 261312   ;;  %vm417_vm3 = vcmask 1041409  }
  0x49   : > { %v983_v6 = vld [vmem:[%s225_s17 + $0x38] sm:$0xff]  ;;  %v264_v7 = vadd.f32 %v979_v4, %v975_v2  ;;  %v987_v8 = vld [vmem:[%s225_s17 + $0x10] sm:$0xff]  ;;  %v995_v13 = vshrl.u32 %v285_v12, 7  ;;  %v280_v15 = vld [vmem:[#allocation5] sm:$0x3]  ;;  %v372_v46 = vand.u32 127, %v285_v12 }
  0x4a   : > { %v989_v9 = vld [vmem:[%s225_s17 + $0x18] sm:$0xff]  ;;  %271 = vadd.xlane.f32.xlu1 %v270_v3  ;;  %v273_v10 = vadd.f32 %v983_v6, %v981_v5  ;;  %v599_v44 = vld [vmem:[%s1079_s2] ss:$0 sm:$0xff]  ;;  %vm420_vm4 = vcmask 254976   ;;  %s255_s11 = scalar_lea.vmem [#allocation7], %s596_s15  ;;  %s606_s26 = sshll.u32 %s858_s22, 10 }
  0x4b   : > { %265 = vadd.xlane.f32.xlu0 %v264_v7  ;;  %v267_v11 = vadd.f32 %v989_v9, %v987_v8  ;;  %v287_v14 = vsub.s32 0, %v995_v13  ;;  %v306_v17 = vsub.s32 1, %v995_v13  ;;  %v377_v49 = vadd.s32 4294967288, %v372_v46  ;;  %s505_s23 = sshll.u32 %s255_s11, 4  ;;  %s1032_s9 = scalar_lea.hbm %s1082_s5, %s606_s26  ;;  %s1027_s23 = int_to_ptr.vmem [resolvable:$true] %s505_s23 }
  0x4c   : > { %v384_v50 = vadd.s32 4294967280, %v372_v46  ;;  %v391_v51 = vadd.s32 4294967272, %v372_v46  ;;  %v375_v55 = vsub.s32 %v372_v46, %v995_v13  ;;  %s492_s22 = scalar_lea.sflag [#allocation4], %s957_s13  ;;  %s729_s15 = scalar_lea.vmem %s1027_s23, 1024 }
  0x4d   : > { %v288_v16 = vrot.slane %v280_v15, %v287_v14  ;;  %v307_v19 = vrot.slane %v280_v15, %v306_v17  ;;  %v380_v54 = vsub.s32 %v377_v49, %v995_v13  ;;  %p730_p12 = scmp.ne.s32.totalorder %s1027_s23, %s729_s15  ;;  %p1099_p1 = scmp.ne.s32.totalorder %s1089_s30, 0 }
  0x4e   : > { %274 = vadd.xlane.f32.xlu1 %v273_v10  ;;  %v387_v56 = vsub.s32 %v384_v50, %v995_v13  ;;  %v394_v57 = vsub.s32 %v391_v51, %v995_v13  ;;  %s804_s16 = smov [#allocation7]  }
  0x4f   : > { %268 = vadd.xlane.f32.xlu0 %v267_v11  ;;  %p731_p7 = pnand %p730_p12, %p1099_p1  ;;  %s733_s17 = sshll.u32 %s804_s16, 4  ;;  %s734_s17 = int_to_ptr.vmem [resolvable:$false] %s733_s17 }
  0x50   : > { %s735_s29 = scalar_lea.vmem %s734_s17, 2048  ;;  %p736_p9 = scmp.lt.s32.totalorder %s1027_s23, %s734_s17 }
  0x51   : > { %p732_p8 = pneg %p731_p7  ;;  %p737_p10 = scmp.lt.s32.totalorder %s735_s29, %s729_s15 }
  0x53   : > { %p738_p2 = por %p737_p10, %p736_p9 }
  0x55   : > { %p739_p0 = pnand %p738_p2, %p732_p8 }
  0x5f   : > { %294 = vbcast.lane.b32.xlu1 %v288_v16, 264 }
  0x63   : > { %309 = vbcast.lane.b32.xlu1 %v307_v19, 256 }
  0x65   : > { %290 = vbcast.lane.b32.xlu0 %v288_v16, 256 }
  0x67   : > { %313 = vbcast.lane.b32.xlu1 %v307_v19, 264 }
  0x69   : > { %298 = vbcast.lane.b32.xlu0 %v288_v16, 272 }
  0x6b   : > { %317 = vbcast.lane.b32.xlu1 %v307_v19, 272 }
  0x6d   : > { %302 = vbcast.lane.b32.xlu0 %v288_v16, 280 }
  0x6f   : > { %321 = vbcast.lane.b32.xlu1 %v307_v19, 280 }
  0xd3   : > { %v272_v20 = vpop.xlane.xlu1 %271 }
  0xd4   : > { %v266_v21 = vpop.xlane.xlu0 %265  ;;  %v278_v33 = vmul.f32 0.00390625, %v272_v20 }
  0xd5   : > { %v276_v25 = vmul.f32 0.00390625, %v266_v21 }
  0xd7   : > { %v275_v22 = vpop.xlane.xlu1 %274 }
  0xd8   : > { %v269_v23 = vpop.xlane.xlu0 %268  ;;  %v279_v38 = vmul.f32 0.00390625, %v275_v22 }
  0xd9   : > { %v277_v24 = vmul.f32 0.00390625, %v269_v23 }
  0xdb   : > { %v295_v26 = vpop.permute.xlu1 %294 }
  0xdc   : > { %v332_v27 = vmul.f32 %v295_v26, %v277_v24  ;;  %v291_v28 = vpop.permute.xlu0 %290 }
  0xdd   : > { %v331_v29 = vmul.f32 %v291_v28, %v276_v25  ;;  %v282_v28 = vld [vmem:[%s1080_s3] sm:$0x3] }
  0xde   : > { %351 = vperm.xlu1 %670, %v332_v27  }
  0xdf   : > { %348 = vperm.xlu0 %669, %v331_v29   ;;  %v310_v30 = vpop.permute.xlu1 %309 }
  0xe0   : > { %v335_v31 = vmul.f32 %v310_v30, %v276_v25  ;;  %v299_v32 = vpop.permute.xlu0 %298 }
  0xe1   : > { %v333_v35 = vmul.f32 %v299_v32, %v278_v33 }
  0xe2   : > { %360 = vperm.xlu1 %670, %v335_v31  }
  0xe3   : > { %v314_v34 = vpop.permute.xlu1 %313 }
  0xe4   : > { %v336_v36 = vmul.f32 %v314_v34, %v277_v24  ;;  %v303_v37 = vpop.permute.xlu0 %302 }
  0xe5   : > { %v334_v40 = vmul.f32 %v303_v37, %v279_v38  ;;  %v283_v37 = vld [vmem:[%s1081_s4] sm:$0x1] }
  0xe6   : > { %363 = vperm.xlu0 %669, %v336_v36   ;;  %354 = vperm.xlu1 %670, %v333_v35  }
  0xe7   : > { %v318_v39 = vpop.permute.xlu1 %317 }
  0xe8   : > { %v337_v41 = vmul.f32 %v318_v39, %v278_v33 }
  0xea   : > { %366 = vperm.xlu0 %669, %v337_v41   ;;  %357 = vperm.xlu1 %670, %v334_v40  }
  0xeb   : > { %v322_v42 = vpop.permute.xlu1 %321 }
  0xec   : > { %v338_v43 = vmul.f32 %v322_v42, %v279_v38 }
  0xee   : > { %369 = vperm.xlu0 %669, %v338_v43  }
  0xf2   : > { %430 = vbcast.lane.b32.xlu0 %v599_v44, 256 }
 0x159   : > { %v352_v45 = vpop.permute.xlu1 %351 }
 0x15a   : > { %v349_v47 = vpop.permute.xlu0 %348  ;;  %v381_v60 = vrot.slane %v352_v45, %v380_v54 }
 0x15b   : > { %v376_v61 = vrot.slane %v349_v47, %v375_v55 }
 0x15d   : > { %v361_v48 = vpop.permute.xlu1 %360  ;;  %v383_v12 = vsel %vm382_vm0, %v381_v60, %v376_v61 }
 0x15e   : > { %v401_v7 = vrot.slane %v361_v48, %v375_v55 }
 0x161   : > { %v355_v52 = vpop.permute.xlu1 %354  ;;  %v364_v53 = vpop.permute.xlu0 %363 }
 0x162   : > { %v405_v62 = vrot.slane %v364_v53, %v380_v54  ;;  %v388_v63 = vrot.slane %v355_v52, %v387_v56 }
 0x164   : > { %v406_v15 = vsel %vm382_vm0, %v405_v62, %v401_v7  ;;  %v390_v17 = vsel %vm389_vm1, %v388_v63, %v383_v12 }
 0x165   : > { %v358_v58 = vpop.permute.xlu1 %357  ;;  %v367_v59 = vpop.permute.xlu0 %366 }
 0x166   : > { %v410_v3 = vrot.slane %v367_v59, %v387_v56  ;;  %v395_v10 = vrot.slane %v358_v58, %v394_v57 }
 0x168   : > { %v411_v18 = vsel %vm389_vm1, %v410_v3, %v406_v15  ;;  %v397_v19 = vsel %vm396_vm2, %v395_v10, %v390_v17 }
 0x169   : > { %v370_v11 = vpop.permute.xlu0 %369 }
 0x16a   : > { %v415_v16 = vrot.slane %v370_v11, %v394_v57 }
 0x16c   : > { %v416_v20 = vsel %vm396_vm2, %v415_v16, %v411_v18 }
 0x16d   : > { %v418_v21 = vsel %vm417_vm3, %v416_v20, %v397_v19  ;;  %v431_v23 = vpop.permute.xlu0 %430 }
 0x16e   : > { %v421_v22 = vsel %vm420_vm4, %v418_v21, 0.0 }
 0x16f   : > { %422 = vadd.xlane.f32.xlu1 %v421_v22 }
 0x1f8   : > { %v423_v24 = vpop.xlane.xlu1 %422 }
 0x1f9   : > { %v433_v25 = vadd.f32 %v431_v23, %v423_v24 }
 0x1fb   : > { %v435_v26 = vmul.f32 0.01, %v433_v25  ;;  %vm434_vm5 = vcmp.gt.f32.partialorder %v433_v25, 0.0 }
 0x1fd   : > { %v436_v27 = vsel %vm434_vm5, %v433_v25, %v435_v26 }
 0x1fe   : > { %439 = vperm.xlu0 %669, %v436_v27  }
 0x279   : > { %v440_v29 = vpop.permute.xlu0 %439 }
 0x27a   : > { %v442_v30 = vmul.f32 %v440_v29, %v282_v28 }
 0x27c   : > { %v443_v31 = vsel %vm420_vm4, %v442_v30, 0.0 }
 0x27d   : > { %v444_v32 = vrot.slane %v443_v31, 4 }
 0x27f   : > { %v445_v33 = vadd.f32 %v444_v32, %v443_v31 }
 0x281   : > { %v446_v34 = vrot.slane %v445_v33, 2 }
 0x283   : > { %v447_v35 = vadd.f32 %v446_v34, %v445_v33 }
 0x285   : > { %v448_v36 = vrot.slane %v447_v35, 1 }
 0x287   : > { %v449_v38 = vadd.f32 %v448_v36, %v447_v35 }
 0x289   : > { %v450_v39 = vadd.f32 %v449_v38, %v283_v37 }
 0x28b   : > { %v451_v40 = vsub.f32 0.0, %v450_v39 }
 0x28d   : > { %v452_v41 = vmul.f32 1.442695, %v451_v40 }
 0x28f   : > { %671 = vpow2.f32 %v452_v41 }
 0x29c   : > { %v672_v42 = vpop.eup %671 }
 0x29d   : > { %v454_v43 = vadd.f32 1.0, %v672_v42 }
 0x29f   : > { %673 = vrcp.f32 %v454_v43 }
 0x2ac   : > { %v674_v44 = vpop.eup %673 }
 0x2ad   : > { %v459_v45 = vrot.slane %v674_v44, %v287_v14 }
 0x2af   : > { %461 = vbcast.lane.b32.xlu0 %v459_v45, 256 }
 0x2b3   : > { %465 = vbcast.lane.b32.xlu0 %v459_v45, 264 }
 0x2b7   : > { %469 = vbcast.lane.b32.xlu0 %v459_v45, 272 }
 0x2bb   : > { %473 = vbcast.lane.b32.xlu0 %v459_v45, 280 }
 0x321   : > { %v462_v46 = vpop.permute.xlu0 %461 }
 0x322   : > { %v475_v47 = vmul.f32 %v462_v46, %v975_v2  ;;  %v476_v48 = vmul.f32 %v462_v46, %v979_v4 }
 0x324   : > { %483 = vst [vmem:[%s255_s11] sm:$0xff] %v475_v47  ;;  %484 = vst [vmem:[%s255_s11 + $0x8] sm:$0xff] %v476_v48 }
 0x325   : > { %v466_v49 = vpop.permute.xlu0 %465 }
 0x326   : > { %v477_v50 = vmul.f32 %v466_v49, %v987_v8  ;;  %v478_v13 = vmul.f32 %v466_v49, %v989_v9 }
 0x328   : > { %485 = vst [vmem:[%s255_s11 + $0x10] sm:$0xff] %v477_v50  ;;  %486 = vst [vmem:[%s255_s11 + $0x18] sm:$0xff] %v478_v13 }
 0x329   : > { %v470_v14 = vpop.permute.xlu0 %469 }
 0x32a   : > { %v479_v51 = vmul.f32 %v470_v14, %v971_v0  ;;  %v480_v2 = vmul.f32 %v470_v14, %v973_v1 }
 0x32c   : > { %487 = vst [vmem:[%s255_s11 + $0x20] sm:$0xff] %v479_v51  ;;  %488 = vst [vmem:[%s255_s11 + $0x28] sm:$0xff] %v480_v2 }
 0x32d   : > { %v474_v4 = vpop.permute.xlu0 %473 }
 0x32e   : > { %v481_v8 = vmul.f32 %v474_v4, %v981_v5  ;;  %v482_v0 = vmul.f32 %v474_v4, %v983_v6 }
 0x330   : > { %489 = vst [vmem:[%s255_s11 + $0x30] sm:$0xff] %v481_v8  ;;  %490 = vst [vmem:[%s255_s11 + $0x38] sm:$0xff] %v482_v0 }
 0x331   : > { %742 = shalt.err (!%p739_p0)
}
 0x332   : > { %s743_s7 = scalar_lea.hbm %s1032_s9, 1024  ;;  %s747_s8 = scalar_lea.hbm %s1082_s5, 2048 }
 0x333   : > { %p744_p4 = scmp.ne.s32.totalorder %s1032_s9, %s743_s7  ;;  %p748_p6 = scmp.lt.s32.totalorder %s1032_s9, %s1082_s5 }
 0x334   : > { %p749_p13 = scmp.lt.s32.totalorder %s747_s8, %s743_s7 }
 0x335   : > { %p745_p11 = pnand %p744_p4, %p1099_p1 }
 0x336   : > { %p750_p3 = por %p749_p13, %p748_p6 }
 0x337   : > { %p746_p5 = pneg %p745_p11 }
 0x339   : > { %p751_p12 = pnand %p750_p3, %p746_p5 }
 0x33b   : > { %754 = shalt.err (!%p751_p12)
}
 0x33c   : > { %s805_s26 = smov 256   ;;  %s806_s28 = smov 16  }
 0x33d   : > { %613 = dma.vmem_to_hbm [thread:$0]  (%p1099_p1), %s1027_s23, 1024, %s1032_s9, %s492_s22, %s805_s26, %s805_s26, %s806_s28  }
 0x33e PF: > { %s520_s14 = sand.u32 1, %s785_s18   ;;  %p1100_p7 = scmp.ne.s32.totalorder %s1090_s6, 0 }
 0x33f   : > { %p1101_p8 = scmp.ge.s32.totalorder %s797_s21, 2  ;;  %s521_s15 = scalar_lea.sflag [#allocation4], %s520_s14 }
 0x341   : > { %p624_p9 = pnand %p1101_p8, %p1100_p7 }
 0x343   : > { %p625_p10 = pneg %p624_p9 }
 0x345   : > { %780 = dma.done.wait (%p625_p10), %s521_s15, 1024  }
 0x346   : > { %782 = vsyncadd (%p625_p10), %s521_s15, 4294966272  ;;  %p19_p2 = scmp.ge.s32.totalorder %s862_s24, 4   ;;  %s1102_s18 = smov %s789_s19 }
 0x347   : > { %s1103_s19 = smov %s793_s20  ;;  %s1104_s20 = smov %s874_s27 }
 0x348   : > { %s1105_s21 = smov %s862_s24  ;;  %21 = sbr.rel (!%p19_p2) target bundleno = 6 (0x6), region = 89 }
 0x34d   :  { %526 = vsyncpa [#allocation3], 1 }
 0x34e   :  { %528 = vsyncpa [#allocation3 + $0x1], 1 }
 0x34f   :  { %529 = vsyncpa [#allocation6], 1 }
 0x350   :  { %530 = vsyncpa [#allocation4], 1 }
 0x351   :  { %532 = vsyncpa [#allocation4 + $0x1], 1 }

</bundles_post_ra>
